<compile_context>
chip_gen: v7x
topology: tpu7x:2x2x1
jax: 0.10.0
libtpu: 0.0.40
codegen_flags: <defaults>
</compile_context>

<pallas_src>
import math

import jax
import jax.numpy as jnp
from jax.experimental import pallas as pl
from jax.experimental.pallas import tpu as pltpu  # noqa: F401  (production-size knobs)

# ---------------- config (small, synthetic) ----------------
B = 2            # batch
S = 16           # sequence length of the keys/values
H = 32           # hidden_size
NH = 4           # num_attention_heads
D = H // NH      # head_dim
I = 64           # intermediate_size
EPS = 1e-6       # layer_norm_eps


def _gelu_tanh(x):
    # gelu_pytorch_tanh
    c = math.sqrt(2.0 / math.pi)
    return 0.5 * x * (1.0 + jnp.tanh(c * (x + 0.044715 * x * x * x)))


# ---------------- Pallas kernel (single invocation, everything VMEM-resident) ----------------
def mhap_kernel(x_ref, probe_ref,
                wq_ref, bq_ref, wk_ref, bk_ref, wv_ref, bv_ref,
                wo_ref, bo_ref,
                g_ref, beta_ref,
                w1_ref, b1_ref, w2_ref, b2_ref,
                mask_s_ref, mask_t_ref,
                o_ref):
    Bn, Sn, Hn = x_ref.shape

    # Flatten batch*seq so every projection is one big MXU matmul (bf16 in, f32 acc).
    x2d = x_ref[...].reshape(Bn * Sn, Hn)                                   # bf16 (B*S, H)

    # --- Q projection: batch-independent, computed exactly once ---
    q = jnp.dot(probe_ref[...], wq_ref[...],
                preferred_element_type=jnp.float32) + bq_ref[...]           # f32 (1, H)

    # --- K / V projections (separate matmuls; see header note on lane alignment) ---
    k = jnp.dot(x2d, wk_ref[...],
                preferred_element_type=jnp.float32) + bk_ref[...]           # f32 (B*S, H)
    v = jnp.dot(x2d, wv_ref[...],
                preferred_element_type=jnp.float32) + bv_ref[...]           # f32 (B*S, H)

    # --- attention scores for all batches & heads in one matmul ---
    # mask_s[j, h] = 1/sqrt(D) iff hidden column j belongs to head h (scale pre-folded):
    #   scores[b*S+s, h] = (1/sqrt(D)) * sum_{d in head h} k[b,s,d] * q[d]
    scores = jnp.dot(k * q, mask_s_ref[...],
                     preferred_element_type=jnp.float32)                    # f32 (B*S, NH)
    scores = scores.reshape(Bn, Sn, NH)                                     # (B, S, NH)

    # --- softmax over the sequence axis (per batch, per head), exact, all in f32 ---
    m = jnp.max(scores, axis=1, keepdims=True)                              # (B, 1, NH)
    e = jnp.exp(scores - m)
    denom = jnp.sum(e, axis=1, keepdims=True)                               # (B, 1, NH)
    p = e / denom                                                           # (B, S, NH)

    # --- context: expand per-head probs back to H lanes, weight V, reduce over S ---
    # mask_t[h, j] = 1 iff hidden column j belongs to head h  ->  p_expand[r, j] = p[r, j // D]
    p_expand = jnp.dot(p.reshape(Bn * Sn, NH), mask_t_ref[...],
                       preferred_element_type=jnp.float32)                  # (B*S, H)
    ctx = jnp.sum((p_expand * v).reshape(Bn, Sn, Hn), axis=1)               # f32 (B, H)

    # --- output projection ---
    attn_out = jnp.dot(ctx.astype(jnp.bfloat16), wo_ref[...],
                       preferred_element_type=jnp.float32) + bo_ref[...]    # f32 (B, H)
    residual = attn_out

    # --- layernorm over H (f32 statistics, biased variance as in nn.LayerNorm) ---
    mean = jnp.mean(attn_out, axis=-1, keepdims=True)
    cen = attn_out - mean
    var = jnp.mean(cen * cen, axis=-1, keepdims=True)
    y = cen * jax.lax.rsqrt(var + EPS) * g_ref[...] + beta_ref[...]         # f32 (B, H)

    # --- MLP (tanh-GELU), bf16 matmul inputs / f32 accumulate, GELU poly in f32 ---
    h1 = jnp.dot(y.astype(jnp.bfloat16), w1_ref[...],
                 preferred_element_type=jnp.float32) + b1_ref[...]          # f32 (B, I)
    h2 = jnp.dot(_gelu_tanh(h1).astype(jnp.bfloat16), w2_ref[...],
                 preferred_element_type=jnp.float32) + b2_ref[...]          # f32 (B, H)

    # Lane-dense (B, H) store.
    o_ref[...] = (residual + h2).astype(o_ref.dtype)


def mhap_forward(x, params):
    """x: (B, S, H) float32 -> (B, H) float32."""
    Bn, Sn, Hn = x.shape
    Dh = Hn // NH
    bf = lambda a: a.astype(jnp.bfloat16)

    # Static head-block masks built once in the wrapper (traced as constants):
    #   mask_s: (H, NH), entry 1/sqrt(D) where hidden column j belongs to head h
    #   mask_t: (NH, H), exact 0/1 transpose (prob -> lane expansion)
    head_of_col = jnp.arange(Hn, dtype=jnp.int32) // Dh
    onehot = (head_of_col[:, None] == jnp.arange(NH, dtype=jnp.int32)[None, :])
    mask_s = onehot.astype(jnp.float32) / math.sqrt(Dh)
    mask_t = onehot.T.astype(jnp.float32)

    # Whole toy problem fits trivially in VMEM -> single invocation, no grid,
    # default whole-array (VMEM) block specs.
    # TODO(synk): at production SigLIP sizes (H~1152, I~4304, S in the hundreds) add a
    # grid: tile the K/V projection over B*S rows ("parallel" axis -> v7x megacore),
    # tile the MLP over the intermediate dim ("arbitrary" axis, f32 VMEM accumulator
    # with pl.when init/finalize), keep the bf16 weights VMEM-resident via
    # constant-returning index_maps, pick block shapes with second-minor multiples of
    # 16 (bf16) and last dims multiples of 128, and raise vmem_limit_bytes via
    # pltpu.CompilerParams per generation (v5e/v6e scoped defaults 16/32 MiB; v7x has
    # only 64 MiB physical VMEM, so the f32 weight set never fits there — bf16 or fp8).
    return pl.pallas_call(
        mhap_kernel,
        out_shape=jax.ShapeDtypeStruct((Bn, Hn), jnp.float32),
    )(bf(x), bf(params["probe"]),
      bf(params["wq"]), params["bq"],
      bf(params["wk"]), params["bk"],
      bf(params["wv"]), params["bv"],
      bf(params["wo"]), params["bo"],
      params["ln_g"], params["ln_b"],
      bf(params["w1"]), params["b1"],
      bf(params["w2"]), params["b2"],
      mask_s, mask_t)


# ---------------- pure-JAX f32 reference (for sanity check) ----------------
def mhap_reference(x, p):
    q = p["probe"] @ p["wq"] + p["bq"]                         # (1, H)
    k = x @ p["wk"] + p["bk"]                                  # (B, S, H)
    v = x @ p["wv"] + p["bv"]
    qh = q.reshape(1, NH, D)
    kh = k.reshape(B, S, NH, D)
    vh = v.reshape(B, S, NH, D)
    scores = jnp.einsum("qhd,bshd->bhqs", qh, kh) / math.sqrt(D)
    attn = jax.nn.softmax(scores, axis=-1)
    ctx = jnp.einsum("bhqs,bshd->bqhd", attn, vh).reshape(B, 1, H)
    attn_out = ctx @ p["wo"] + p["bo"]                         # (B, 1, H)
    residual = attn_out
    mean = attn_out.mean(-1, keepdims=True)
    var = ((attn_out - mean) ** 2).mean(-1, keepdims=True)
    y = (attn_out - mean) / jnp.sqrt(var + EPS) * p["ln_g"] + p["ln_b"]
    h1 = y @ p["w1"] + p["b1"]
    h2 = _gelu_tanh(h1) @ p["w2"] + p["b2"]
    return (residual + h2)[:, 0]


def init_params(key):
    ks = jax.random.split(key, 16)
    n = lambda k, shape, std: (jax.random.normal(k, shape, jnp.float32) * std)
    xav = lambda fi, fo: math.sqrt(2.0 / (fi + fo))
    return {
        "probe": n(ks[0], (1, H), 0.02),
        "wq": n(ks[1], (H, H), 1.0 / math.sqrt(H)), "bq": n(ks[2], (1, H), 0.02),
        "wk": n(ks[3], (H, H), 1.0 / math.sqrt(H)), "bk": n(ks[4], (1, H), 0.02),
        "wv": n(ks[5], (H, H), 1.0 / math.sqrt(H)), "bv": n(ks[6], (1, H), 0.02),
        "wo": n(ks[7], (H, H), 1.0 / math.sqrt(H)), "bo": n(ks[8], (1, H), 0.02),
        "ln_g": 1.0 + n(ks[9], (1, H), 0.02), "ln_b": n(ks[10], (1, H), 0.02),
        "w1": n(ks[11], (H, I), xav(H, I)), "b1": jnp.zeros((1, I), jnp.float32),
        "w2": n(ks[12], (I, H), xav(I, H)), "b2": jnp.zeros((1, H), jnp.float32),
    }


if __name__ == "__main__":
    key = jax.random.PRNGKey(0)
    kx, kp = jax.random.split(key)
    x = jax.random.normal(kx, (B, S, H), jnp.float32)
    params = init_params(kp)

    out = mhap_forward(x, params)
    out = jax.block_until_ready(out)
    assert out.shape == (B, H), out.shape

    ref = mhap_reference(x, params)
    # Tolerance accounts for bf16 matmul inputs (f32 accumulation) vs. the pure-f32
    # reference; the exact softmax / f32 LN / f32 GELU keep the rest of the path tight.
    assert jnp.allclose(out, ref, atol=3e-2, rtol=3e-2), (
        float(jnp.max(jnp.abs(out - ref))))

    print("KERNEL_OK")
</pallas_src>

<mosaic_0001>
module attributes {stable_mosaic.version = 11 : i64} {
  func.func @mhap_kernel(%arg0: memref<2x16x32xbf16, #tpu.memory_space<vmem>>, %arg1: memref<1x32xbf16, #tpu.memory_space<vmem>>, %arg2: memref<32x32xbf16, #tpu.memory_space<vmem>>, %arg3: memref<1x32xf32, #tpu.memory_space<vmem>>, %arg4: memref<32x32xbf16, #tpu.memory_space<vmem>>, %arg5: memref<1x32xf32, #tpu.memory_space<vmem>>, %arg6: memref<32x32xbf16, #tpu.memory_space<vmem>>, %arg7: memref<1x32xf32, #tpu.memory_space<vmem>>, %arg8: memref<32x32xbf16, #tpu.memory_space<vmem>>, %arg9: memref<1x32xf32, #tpu.memory_space<vmem>>, %arg10: memref<1x32xf32, #tpu.memory_space<vmem>>, %arg11: memref<1x32xf32, #tpu.memory_space<vmem>>, %arg12: memref<32x64xbf16, #tpu.memory_space<vmem>>, %arg13: memref<1x64xf32, #tpu.memory_space<vmem>>, %arg14: memref<64x32xbf16, #tpu.memory_space<vmem>>, %arg15: memref<1x32xf32, #tpu.memory_space<vmem>>, %arg16: memref<32x4xf32, #tpu.memory_space<vmem>>, %arg17: memref<4x32xf32, #tpu.memory_space<vmem>>, %arg18: memref<2x32xf32, #tpu.memory_space<vmem>>) attributes {dimension_semantics = [], scalar_prefetch = 0 : i64, scratch_operands = 0 : i64, tpu.core_type = #tpu.core_type<tc>} {
    %c0 = arith.constant 0 : index
    %c0_0 = arith.constant 0 : index
    %c0_1 = arith.constant 0 : index
    %0 = vector.load %arg0[%c0, %c0_0, %c0_1] : memref<2x16x32xbf16, #tpu.memory_space<vmem>>, vector<2x16x32xbf16>
    %1 = vector.shape_cast %0 : vector<2x16x32xbf16> to vector<32x32xbf16>
    %c0_2 = arith.constant 0 : index
    %c0_3 = arith.constant 0 : index
    %2 = vector.load %arg1[%c0_2, %c0_3] : memref<1x32xbf16, #tpu.memory_space<vmem>>, vector<1x32xbf16>
    %c0_4 = arith.constant 0 : index
    %c0_5 = arith.constant 0 : index
    %3 = vector.load %arg2[%c0_4, %c0_5] : memref<32x32xbf16, #tpu.memory_space<vmem>>, vector<32x32xbf16>
    %cst = arith.constant dense<0.000000e+00> : vector<1x32xf32>
    %4 = tpu.matmul %2, %3, %cst {dimension_numbers = #tpu.dot_dimension_numbers<[1], [0], [0], [1], [0, 0, 1, 1], [], []>} : vector<1x32xbf16>, vector<32x32xbf16>, vector<1x32xf32> -> vector<1x32xf32>
    %c0_6 = arith.constant 0 : index
    %c0_7 = arith.constant 0 : index
    %5 = vector.load %arg3[%c0_6, %c0_7] : memref<1x32xf32, #tpu.memory_space<vmem>>, vector<1x32xf32>
    %6 = arith.addf %4, %5 : vector<1x32xf32>
    %c0_8 = arith.constant 0 : index
    %c0_9 = arith.constant 0 : index
    %7 = vector.load %arg4[%c0_8, %c0_9] : memref<32x32xbf16, #tpu.memory_space<vmem>>, vector<32x32xbf16>
    %cst_10 = arith.constant dense<0.000000e+00> : vector<32x32xf32>
    %8 = tpu.matmul %1, %7, %cst_10 {dimension_numbers = #tpu.dot_dimension_numbers<[1], [0], [0], [1], [0, 0, 1, 1], [], []>} : vector<32x32xbf16>, vector<32x32xbf16>, vector<32x32xf32> -> vector<32x32xf32>
    %c0_11 = arith.constant 0 : index
    %c0_12 = arith.constant 0 : index
    %9 = vector.load %arg5[%c0_11, %c0_12] : memref<1x32xf32, #tpu.memory_space<vmem>>, vector<1x32xf32>
    %10 = vector.broadcast %9 : vector<1x32xf32> to vector<32x32xf32>
    %11 = arith.addf %8, %10 : vector<32x32xf32>
    %c0_13 = arith.constant 0 : index
    %c0_14 = arith.constant 0 : index
    %12 = vector.load %arg6[%c0_13, %c0_14] : memref<32x32xbf16, #tpu.memory_space<vmem>>, vector<32x32xbf16>
    %cst_15 = arith.constant dense<0.000000e+00> : vector<32x32xf32>
    %13 = tpu.matmul %1, %12, %cst_15 {dimension_numbers = #tpu.dot_dimension_numbers<[1], [0], [0], [1], [0, 0, 1, 1], [], []>} : vector<32x32xbf16>, vector<32x32xbf16>, vector<32x32xf32> -> vector<32x32xf32>
    %c0_16 = arith.constant 0 : index
    %c0_17 = arith.constant 0 : index
    %14 = vector.load %arg7[%c0_16, %c0_17] : memref<1x32xf32, #tpu.memory_space<vmem>>, vector<1x32xf32>
    %15 = vector.broadcast %14 : vector<1x32xf32> to vector<32x32xf32>
    %16 = arith.addf %13, %15 : vector<32x32xf32>
    %17 = vector.broadcast %6 : vector<1x32xf32> to vector<32x32xf32>
    %18 = arith.mulf %11, %17 : vector<32x32xf32>
    %c0_18 = arith.constant 0 : index
    %c0_19 = arith.constant 0 : index
    %19 = vector.load %arg16[%c0_18, %c0_19] : memref<32x4xf32, #tpu.memory_space<vmem>>, vector<32x4xf32>
    %cst_20 = arith.constant dense<0.000000e+00> : vector<32x4xf32>
    %20 = tpu.matmul %18, %19, %cst_20 {dimension_numbers = #tpu.dot_dimension_numbers<[1], [0], [0], [1], [0, 0, 1, 1], [], []>} : vector<32x32xf32>, vector<32x4xf32>, vector<32x4xf32> -> vector<32x4xf32>
    %21 = vector.shape_cast %20 : vector<32x4xf32> to vector<2x16x4xf32>
    %cst_21 = arith.constant dense<0xFF800000> : vector<2x4xf32>
    %22 = vector.multi_reduction <maximumf>, %21, %cst_21 [1] : vector<2x16x4xf32> to vector<2x4xf32>
    %23 = vector.shape_cast %22 : vector<2x4xf32> to vector<2x1x4xf32>
    %24 = vector.broadcast %23 : vector<2x1x4xf32> to vector<2x16x4xf32>
    %25 = arith.subf %21, %24 : vector<2x16x4xf32>
    %26 = math.exp %25 : vector<2x16x4xf32>
    %cst_22 = arith.constant dense<0.000000e+00> : vector<2x4xf32>
    %27 = vector.multi_reduction <add>, %26, %cst_22 [1] : vector<2x16x4xf32> to vector<2x4xf32>
    %28 = vector.shape_cast %27 : vector<2x4xf32> to vector<2x1x4xf32>
    %29 = vector.broadcast %28 : vector<2x1x4xf32> to vector<2x16x4xf32>
    %30 = arith.divf %26, %29 : vector<2x16x4xf32>
    %31 = vector.shape_cast %30 : vector<2x16x4xf32> to vector<32x4xf32>
    %c0_23 = arith.constant 0 : index
    %c0_24 = arith.constant 0 : index
    %32 = vector.load %arg17[%c0_23, %c0_24] : memref<4x32xf32, #tpu.memory_space<vmem>>, vector<4x32xf32>
    %cst_25 = arith.constant dense<0.000000e+00> : vector<32x32xf32>
    %33 = tpu.matmul %31, %32, %cst_25 {dimension_numbers = #tpu.dot_dimension_numbers<[1], [0], [0], [1], [0, 0, 1, 1], [], []>} : vector<32x4xf32>, vector<4x32xf32>, vector<32x32xf32> -> vector<32x32xf32>
    %34 = arith.mulf %33, %16 : vector<32x32xf32>
    %35 = vector.shape_cast %34 : vector<32x32xf32> to vector<2x16x32xf32>
    %cst_26 = arith.constant dense<0.000000e+00> : vector<2x32xf32>
    %36 = vector.multi_reduction <add>, %35, %cst_26 [1] : vector<2x16x32xf32> to vector<2x32xf32>
    %37 = arith.truncf %36 : vector<2x32xf32> to vector<2x32xbf16>
    %c0_27 = arith.constant 0 : index
    %c0_28 = arith.constant 0 : index
    %38 = vector.load %arg8[%c0_27, %c0_28] : memref<32x32xbf16, #tpu.memory_space<vmem>>, vector<32x32xbf16>
    %cst_29 = arith.constant dense<0.000000e+00> : vector<2x32xf32>
    %39 = tpu.matmul %37, %38, %cst_29 {dimension_numbers = #tpu.dot_dimension_numbers<[1], [0], [0], [1], [0, 0, 1, 1], [], []>} : vector<2x32xbf16>, vector<32x32xbf16>, vector<2x32xf32> -> vector<2x32xf32>
    %c0_30 = arith.constant 0 : index
    %c0_31 = arith.constant 0 : index
    %40 = vector.load %arg9[%c0_30, %c0_31] : memref<1x32xf32, #tpu.memory_space<vmem>>, vector<1x32xf32>
    %41 = vector.broadcast %40 : vector<1x32xf32> to vector<2x32xf32>
    %42 = arith.addf %39, %41 : vector<2x32xf32>
    %cst_32 = arith.constant dense<0.000000e+00> : vector<2xf32>
    %43 = vector.multi_reduction <add>, %42, %cst_32 [1] : vector<2x32xf32> to vector<2xf32>
    %44 = vector.shape_cast %43 : vector<2xf32> to vector<2x1xf32>
    %cst_33 = arith.constant 3.200000e+01 : f32
    %45 = vector.broadcast %cst_33 : f32 to vector<2x1xf32>
    %46 = arith.divf %44, %45 : vector<2x1xf32>
    %47 = vector.broadcast %46 : vector<2x1xf32> to vector<2x32xf32>
    %48 = arith.subf %42, %47 : vector<2x32xf32>
    %49 = arith.mulf %48, %48 : vector<2x32xf32>
    %cst_34 = arith.constant dense<0.000000e+00> : vector<2xf32>
    %50 = vector.multi_reduction <add>, %49, %cst_34 [1] : vector<2x32xf32> to vector<2xf32>
    %51 = vector.shape_cast %50 : vector<2xf32> to vector<2x1xf32>
    %cst_35 = arith.constant 3.200000e+01 : f32
    %52 = vector.broadcast %cst_35 : f32 to vector<2x1xf32>
    %53 = arith.divf %51, %52 : vector<2x1xf32>
    %cst_36 = arith.constant 9.99999997E-7 : f32
    %54 = vector.broadcast %cst_36 : f32 to vector<2x1xf32>
    %55 = arith.addf %53, %54 : vector<2x1xf32>
    %56 = math.rsqrt %55 : vector<2x1xf32>
    %57 = vector.broadcast %56 : vector<2x1xf32> to vector<2x32xf32>
    %58 = arith.mulf %48, %57 : vector<2x32xf32>
    %c0_37 = arith.constant 0 : index
    %c0_38 = arith.constant 0 : index
    %59 = vector.load %arg10[%c0_37, %c0_38] : memref<1x32xf32, #tpu.memory_space<vmem>>, vector<1x32xf32>
    %60 = vector.broadcast %59 : vector<1x32xf32> to vector<2x32xf32>
    %61 = arith.mulf %58, %60 : vector<2x32xf32>
    %c0_39 = arith.constant 0 : index
    %c0_40 = arith.constant 0 : index
    %62 = vector.load %arg11[%c0_39, %c0_40] : memref<1x32xf32, #tpu.memory_space<vmem>>, vector<1x32xf32>
    %63 = vector.broadcast %62 : vector<1x32xf32> to vector<2x32xf32>
    %64 = arith.addf %61, %63 : vector<2x32xf32>
    %65 = arith.truncf %64 : vector<2x32xf32> to vector<2x32xbf16>
    %c0_41 = arith.constant 0 : index
    %c0_42 = arith.constant 0 : index
    %66 = vector.load %arg12[%c0_41, %c0_42] : memref<32x64xbf16, #tpu.memory_space<vmem>>, vector<32x64xbf16>
    %cst_43 = arith.constant dense<0.000000e+00> : vector<2x64xf32>
    %67 = tpu.matmul %65, %66, %cst_43 {dimension_numbers = #tpu.dot_dimension_numbers<[1], [0], [0], [1], [0, 0, 1, 1], [], []>} : vector<2x32xbf16>, vector<32x64xbf16>, vector<2x64xf32> -> vector<2x64xf32>
    %c0_44 = arith.constant 0 : index
    %c0_45 = arith.constant 0 : index
    %68 = vector.load %arg13[%c0_44, %c0_45] : memref<1x64xf32, #tpu.memory_space<vmem>>, vector<1x64xf32>
    %69 = vector.broadcast %68 : vector<1x64xf32> to vector<2x64xf32>
    %70 = arith.addf %67, %69 : vector<2x64xf32>
    %cst_46 = arith.constant 5.000000e-01 : f32
    %71 = vector.broadcast %cst_46 : f32 to vector<2x64xf32>
    %72 = arith.mulf %71, %70 : vector<2x64xf32>
    %cst_47 = arith.constant 4.471500e-02 : f32
    %73 = vector.broadcast %cst_47 : f32 to vector<2x64xf32>
    %74 = arith.mulf %73, %70 : vector<2x64xf32>
    %75 = arith.mulf %74, %70 : vector<2x64xf32>
    %76 = arith.mulf %75, %70 : vector<2x64xf32>
    %77 = arith.addf %70, %76 : vector<2x64xf32>
    %cst_48 = arith.constant 0.797884583 : f32
    %78 = vector.broadcast %cst_48 : f32 to vector<2x64xf32>
    %79 = arith.mulf %78, %77 : vector<2x64xf32>
    %80 = math.tanh %79 : vector<2x64xf32>
    %cst_49 = arith.constant 1.000000e+00 : f32
    %81 = vector.broadcast %cst_49 : f32 to vector<2x64xf32>
    %82 = arith.addf %81, %80 : vector<2x64xf32>
    %83 = arith.mulf %72, %82 : vector<2x64xf32>
    %84 = arith.truncf %83 : vector<2x64xf32> to vector<2x64xbf16>
    %c0_50 = arith.constant 0 : index
    %c0_51 = arith.constant 0 : index
    %85 = vector.load %arg14[%c0_50, %c0_51] : memref<64x32xbf16, #tpu.memory_space<vmem>>, vector<64x32xbf16>
    %cst_52 = arith.constant dense<0.000000e+00> : vector<2x32xf32>
    %86 = tpu.matmul %84, %85, %cst_52 {dimension_numbers = #tpu.dot_dimension_numbers<[1], [0], [0], [1], [0, 0, 1, 1], [], []>} : vector<2x64xbf16>, vector<64x32xbf16>, vector<2x32xf32> -> vector<2x32xf32>
    %c0_53 = arith.constant 0 : index
    %c0_54 = arith.constant 0 : index
    %87 = vector.load %arg15[%c0_53, %c0_54] : memref<1x32xf32, #tpu.memory_space<vmem>>, vector<1x32xf32>
    %88 = vector.broadcast %87 : vector<1x32xf32> to vector<2x32xf32>
    %89 = arith.addf %86, %88 : vector<2x32xf32>
    %90 = arith.addf %42, %89 : vector<2x32xf32>
    %c0_55 = arith.constant 0 : index
    %c0_56 = arith.constant 0 : index
    %91 = vector.load %arg18[%c0_55, %c0_56] : memref<2x32xf32, #tpu.memory_space<vmem>>, vector<2x32xf32>
    tpu.vector_store %arg18[%c0_55, %c0_56], %90 {strides = array<i32>} : memref<2x32xf32, #tpu.memory_space<vmem>>, vector<2x32xf32>,
    return
  }
}

</mosaic_0001>

<bundles_post_ra>
// kernel: tpu_custom_call.1
= control target key start
LH: loop header
LB: loop body
LE: loop exit
PB: predicated region body
PF: predicated region fallthrough
CT: control target
= control target key end

     0   :  { %s1558_s0 = inlined_call_operand.vmem [shape: bf16[2,16,32], index: 0, kind: input, shape index: {}]   ;;  %s1559_s1 = inlined_call_operand.vmem [shape: bf16[1,32], index: 1, kind: input, shape index: {}]   ;;  %s1560_s2 = inlined_call_operand.vmem [shape: bf16[32,32], index: 2, kind: input, shape index: {}]   ;;  %s1561_s3 = inlined_call_operand.hbm [shape: f32[1,32], index: 3, kind: input, shape index: {}]   ;;  %s1562_s4 = inlined_call_operand.vmem [shape: bf16[32,32], index: 4, kind: input, shape index: {}]   ;;  %s1563_s5 = inlined_call_operand.hbm [shape: f32[1,32], index: 5, kind: input, shape index: {}]   ;;  %s1564_s6 = inlined_call_operand.vmem [shape: bf16[32,32], index: 6, kind: input, shape index: {}]   ;;  %s1565_s7 = inlined_call_operand.hbm [shape: f32[1,32], index: 7, kind: input, shape index: {}]   ;;  %s1566_s8 = inlined_call_operand.vmem [shape: bf16[32,32], index: 8, kind: input, shape index: {}]   ;;  %s1567_s9 = inlined_call_operand.hbm [shape: f32[1,32], index: 9, kind: input, shape index: {}]   ;;  %s1568_s10 = inlined_call_operand.hbm [shape: f32[1,32], index: 10, kind: input, shape index: {}]   ;;  %s1569_s11 = inlined_call_operand.vmem [shape: f32[1,32], index: 11, kind: input, shape index: {}]   ;;  %s1570_s12 = inlined_call_operand.vmem [shape: bf16[32,64], index: 12, kind: input, shape index: {}]   ;;  %s1571_s13 = inlined_call_operand.vmem [shape: f32[1,64], index: 13, kind: input, shape index: {}]   ;;  %s1572_s14 = inlined_call_operand.vmem [shape: bf16[64,32], index: 14, kind: input, shape index: {}]   ;;  %s1573_s15 = inlined_call_operand.vmem [shape: f32[1,32], index: 15, kind: input, shape index: {}]   ;;  %s1574_s16 = inlined_call_operand.vmem [shape: f32[32,4], index: 16, kind: input, shape index: {}]   ;;  %s1575_s17 = inlined_call_operand.vmem [shape: f32[4,32], index: 17, kind: input, shape index: {}]   ;;  %s1576_s18 = inlined_call_operand.hbm [shape: f32[2,32], index: 18, kind: output, shape index: {}]  }
   0x1   :  { %1579 = sst [smem:[#allocation16_spill]] %s1558_s0 }
   0x2   :  { %1580 = sst [smem:[#allocation17_spill]] %s1559_s1 }
   0x3   :  { %1581 = sst [smem:[#allocation18_spill]] %s1560_s2 }
   0x4   :  { %23 = vsyncpa [#allocation3], 0 }
   0x5   :  { %24 = vsyncpa [#allocation6], 0 }
   0x6   :  { %25 = vsyncpa [#allocation9], 0 }
   0x7   :  { %26 = vsyncpa [#allocation4], 0  ;;  %s1255_s27 = smov [#allocation5]   ;;  %s1256_s29 = smov [#allocation8]  }
   0x8   :  { %s51_s28 = sshll.u32 %s1255_s27, 4  ;;  %s75_s30 = sshll.u32 %s1256_s29, 4  ;;  %s52_s28 = int_to_ptr.vmem [resolvable:$true] %s51_s28  ;;  %s76_s30 = int_to_ptr.vmem [resolvable:$true] %s75_s30 }
   0x9   :  { %s1115_s1 = scalar_lea.hbm %s1563_s5, 16 }
   0xa   :  { %p1116_p0 = scmp.ne.s32.totalorder %s1563_s5, %s1115_s1  ;;  %p1119_p1 = scmp.lt.u32.totalorder %s1115_s1, %s1563_s5 }
   0xc   :  { %p1121_p2 = pnand %p1119_p1, %p1116_p0 }
   0xe   :  { %1124 = shalt.err (!%p1121_p2)
}
   0xf   :  { %s1125_s23 = scalar_lea.vmem %s52_s28, 16  ;;  %s1129_s24 = scalar_lea.vmem %s52_s28, 32 }
  0x10   :  { %p1126_p3 = scmp.ne.s32.totalorder %s52_s28, %s1125_s23  ;;  %p1130_p4 = scmp.lt.s32.totalorder %s52_s28, %s52_s28 }
  0x11   :  { %p1131_p5 = scmp.lt.s32.totalorder %s1129_s24, %s1125_s23 }
  0x13   :  { %p1132_p6 = por %p1131_p5, %p1130_p4 }
  0x15   :  { %p1133_p7 = pnand %p1132_p6, %p1126_p3 }
  0x17   :  { %1136 = shalt.err (!%p1133_p7)
}
  0x18   :  { %54 = dma.hbm_to_vmem [thread:$0]  %s1563_s5, 16, %s52_s28, [#allocation6]  }
  0x19   :  { %s1137_s0 = scalar_lea.hbm %s1567_s9, 16 }
  0x1a   :  { %p1138_p8 = scmp.ne.s32.totalorder %s1567_s9, %s1137_s0  ;;  %p1141_p9 = scmp.lt.u32.totalorder %s1137_s0, %s1567_s9 }
  0x1c   :  { %p1143_p10 = pnand %p1141_p9, %p1138_p8 }
  0x1e   :  { %1146 = shalt.err (!%p1143_p10)
}
  0x1f   :  { %s1147_s22 = scalar_lea.vmem %s76_s30, 16  ;;  %s1151_s2 = scalar_lea.vmem %s76_s30, 32 }
  0x20   :  { %p1148_p11 = scmp.ne.s32.totalorder %s76_s30, %s1147_s22  ;;  %p1152_p12 = scmp.lt.s32.totalorder %s76_s30, %s76_s30 }
  0x21   :  { %p1153_p13 = scmp.lt.s32.totalorder %s1151_s2, %s1147_s22 }
  0x23   :  { %p1154_p0 = por %p1153_p13, %p1152_p12 }
  0x25   :  { %p1155_p1 = pnand %p1154_p0, %p1148_p11 }
  0x27   :  { %1158 = shalt.err (!%p1155_p1)
}
  0x28   :  { %78 = dma.hbm_to_vmem [thread:$0]  %s1567_s9, 16, %s76_s30, [#allocation9]  }
  0x29   :  { %s1257_s23 = smov [#allocation2]   ;;  %s1258_s25 = smov [#allocation7]  }
  0x2a   :  { %s39_s24 = sshll.u32 %s1257_s23, 4  ;;  %s63_s26 = sshll.u32 %s1258_s25, 4  ;;  %s40_s24 = int_to_ptr.vmem [resolvable:$true] %s39_s24  ;;  %s64_s26 = int_to_ptr.vmem [resolvable:$true] %s63_s26 }
  0x2b   :  { %s1159_s0 = scalar_lea.hbm %s1561_s3, 16 }
  0x2c   :  { %p1160_p2 = scmp.ne.s32.totalorder %s1561_s3, %s1159_s0  ;;  %p1163_p3 = scmp.lt.u32.totalorder %s1159_s0, %s1561_s3 }
  0x2e   :  { %p1165_p4 = pnand %p1163_p3, %p1160_p2 }
  0x30   :  { %1168 = shalt.err (!%p1165_p4)
}
  0x31   :  { %s1169_s9 = scalar_lea.vmem %s40_s24, 16  ;;  %s1173_s30 = scalar_lea.vmem %s40_s24, 32 }
  0x32   :  { %p1170_p5 = scmp.ne.s32.totalorder %s40_s24, %s1169_s9  ;;  %p1174_p6 = scmp.lt.s32.totalorder %s40_s24, %s40_s24 }
  0x33   :  { %p1175_p7 = scmp.lt.s32.totalorder %s1173_s30, %s1169_s9 }
  0x35   :  { %p1176_p8 = por %p1175_p7, %p1174_p6 }
  0x37   :  { %p1177_p9 = pnand %p1176_p8, %p1170_p5 }
  0x39   :  { %1180 = shalt.err (!%p1177_p9)
}
  0x3a   :  { %42 = dma.hbm_to_vmem [thread:$0]  %s1561_s3, 16, %s40_s24, [#allocation3]  }
  0x3b   :  { %s1181_s23 = scalar_lea.hbm %s1565_s7, 16 }
  0x3c   :  { %p1182_p10 = scmp.ne.s32.totalorder %s1565_s7, %s1181_s23  ;;  %p1185_p11 = scmp.lt.u32.totalorder %s1181_s23, %s1565_s7 }
  0x3e   :  { %p1187_p12 = pnand %p1185_p11, %p1182_p10 }
  0x40   :  { %1190 = shalt.err (!%p1187_p12)
}
  0x41   :  { %s1191_s19 = scalar_lea.vmem %s64_s26, 16  ;;  %s1195_s1 = scalar_lea.vmem %s64_s26, 32 }
  0x42   :  { %p1192_p13 = scmp.ne.s32.totalorder %s64_s26, %s1191_s19  ;;  %p1196_p0 = scmp.lt.s32.totalorder %s64_s26, %s64_s26 }
  0x43   :  { %p1197_p1 = scmp.lt.s32.totalorder %s1195_s1, %s1191_s19 }
  0x45   :  { %p1198_p2 = por %p1197_p1, %p1196_p0 }
  0x47   :  { %p1199_p3 = pnand %p1198_p2, %p1192_p13 }
  0x49   :  { %1202 = shalt.err (!%p1199_p3)
}
  0x4a   :  { %66 = dma.hbm_to_vmem [thread:$0]  %s1565_s7, 16, %s64_s26, [#allocation6]  }
  0x4b   :  { %s1259_s20 = smov [#allocation10]   ;;  %s1203_s22 = scalar_lea.hbm %s1568_s10, 16 }
  0x4c   :  { %s85_s21 = sshll.u32 %s1259_s20, 4  ;;  %p1204_p4 = scmp.ne.s32.totalorder %s1568_s10, %s1203_s22  ;;  %s86_s21 = int_to_ptr.vmem [resolvable:$true] %s85_s21 }
  0x4d   :  { %p1207_p5 = scmp.lt.u32.totalorder %s1203_s22, %s1568_s10 }
  0x4f   :  { %p1209_p6 = pnand %p1207_p5, %p1204_p4 }
  0x51   :  { %1212 = shalt.err (!%p1209_p6)
}
  0x52   :  { %s1213_s25 = scalar_lea.vmem %s86_s21, 16  ;;  %s1217_s7 = scalar_lea.vmem %s86_s21, 32 }
  0x53   :  { %p1214_p7 = scmp.ne.s32.totalorder %s86_s21, %s1213_s25  ;;  %p1218_p8 = scmp.lt.s32.totalorder %s86_s21, %s86_s21 }
  0x54   :  { %p1219_p9 = scmp.lt.s32.totalorder %s1217_s7, %s1213_s25 }
  0x56   :  { %p1220_p10 = por %p1219_p9, %p1218_p8 }
  0x58   :  { %p1221_p11 = pnand %p1220_p10, %p1214_p7 }
  0x5a   :  { %1224 = shalt.err (!%p1221_p11)
}
  0x5b   :  { %88 = dma.hbm_to_vmem [thread:$0]  %s1568_s10, 16, %s86_s21, [#allocation9]  }
  0x5c   :  { %1247 = dma.done.wait [#allocation3], 16  }
  0x5d   :  { %1248 = vsyncadd [#allocation3], 4294967280 }
  0x5e   :  { %1249 = dma.done.wait [#allocation6], 32  }
  0x5f   :  { %1250 = vsyncadd [#allocation6], 4294967264 }
  0x60   :  { %1251 = dma.done.wait [#allocation9], 32  }
  0x61   :  { %1252 = vsyncadd [#allocation9], 4294967264  ;;  %v1260_v0 = vmov 0.0   ;;  %vm1261_vm0 = vmmov 0   ;;  %s1582_s19 = sld [smem:[#allocation18_spill]]  ;;  %v1084_v2 = vld [vmem:[%s1562_s4] sm:$0xff]   ;;  %v345_v14 = vlaneseq }
  0x62   :  { %993 = vmatprep.subr.bf16.mxu0 %v1260_v0  ;;  %997 = vmatprep.mubr.msk.bf16.mxu0 %vm1261_vm0, %v1260_v0  ;;  %v1086_v4 = vld [vmem:[%s1562_s4 + $0x8] sm:$0xff]   ;;  %vm141_vm1 = vcmask 261120   ;;  %s1583_s22 = sld [smem:[#allocation16_spill]]  ;;  %s1584_s28 = sld [smem:[#allocation17_spill]]  ;;  %v353_v8 = vld [vmem:[%s1574_s16] sm:$0xff]  ;;  %v355_v11 = vld [vmem:[%s1574_s16 + $0x10] sm:$0xff] }
  0x63   :  { %1001 = vmatprep.subr.bf16.mxu1 %v1084_v2  ;;  %v354_v9 = vld [vmem:[%s1574_s16 + $0x8] sm:$0xff]  ;;  %v356_v12 = vld [vmem:[%s1574_s16 + $0x18] sm:$0xff]  ;;  %v346_v15 = vshrl.u32 %v345_v14, 7  ;;  %v128_v16 = vld [vmem:[#allocation2] sm:$0x1]  ;;  %vm522_vm2 = vcmask 1043456  }
  0x64   :  { %1002 = vmatpush3.bf16.msra.mxu1 %v1084_v2  ;;  %v1067_v10 = vpack.c.bf16 %v354_v9, %v353_v8  ;;  %v1071_v13 = vpack.c.bf16 %v356_v12, %v355_v11  ;;  %v921_v19 = vld [vmem:[#allocation5] ss:$0 sm:$0xff]  ;;  %v1090_v38 = vld [vmem:[%s1564_s6 + $0x8] sm:$0xff]   ;;  %vm454_vm3 = vcmask 31744   ;;  %vm650_vm4 = vcmask 1041409   ;;  %s1262_s1 = smov [#allocation11]  }
  0x65   :  { %1003 = vmatprep.subr.bf16.mxu1 %v1086_v4  ;;  %v347_v17 = vsub.s32 0, %v346_v15  ;;  %v1089_v37 = vld [vmem:[%s1564_s6] sm:$0xff]   ;;  %vm708_vm5 = vcmask 254976   ;;  %vm855_vm6 = vcmask 523264   ;;  %s907_s16 = sshll.u32 %s1262_s1, 4  ;;  %s908_s16 = int_to_ptr.vmem [resolvable:$true] %s907_s16 }
  0x66   :  { %v509_v39 = vld [vmem:[%s1575_s17] sm:$0xf]  ;;  %s1225_s3 = scalar_lea.vmem %s908_s16, 32  ;;  %p1230_p13 = scmp.lt.s32.totalorder %s908_s16, %s908_s16 }
  0x67   :  { %v1083_v1 = vld [vmem:[%s1582_s19] sm:$0xff]   ;;  %v1085_v3 = vld [vmem:[%s1582_s19 + $0x8] sm:$0xff]   ;;  %p1226_p12 = scmp.ne.s32.totalorder %s908_s16, %s1225_s3  ;;  %p1231_p0 = scmp.lt.s32.totalorder %s1225_s3, %s1225_s3 }
  0x68   :  { %994 = vmatpush3.bf16.msra.mxu0 %v1083_v1  ;;  %v1087_v5 = vld [vmem:[%s1583_s22] sm:$0xff]   ;;  %v1088_v7 = vld [vmem:[%s1583_s22 + $0x8] sm:$0xff]   ;;  %1004 = vmatpush3.bf16.msra.mxu1 %v1086_v4 }
  0x69   :  { %995 = vmatprep.subr.bf16.mxu0 %v1260_v0  ;;  %v123_v6 = vld [vmem:[%s1584_s28] sm:$0x1]  ;;  %1005 = vmatprep.mubr.msk.bf16.mxu1 %vm141_vm1, %v1087_v5  ;;  %p1232_p1 = por %p1231_p0, %p1230_p13 }
  0x6a   :  { %1068 = vmatprep.subr.bf16.mxu1 %v1067_v10 }
  0x6b   :  { %1006 = vmatmul.mubr.msk.bf16.vlgmr.msra.gmra.mrb[0].mxu1 %vm141_vm1, %v1088_v7  ;;  %p1233_p2 = pnand %p1232_p1, %p1226_p12 }
  0x6c   :  { %996 = vmatpush3.bf16.msra.mxu0 %v1085_v3  ;;  %1070 = vmatpush3.bf16.msra.mxu1 %v1067_v10 }
  0x6d   :  { %1072 = vmatprep.subr.bf16.mxu1 %v1071_v13  ;;  %1009 = vmatprep.subr.bf16.mxu0 %v1089_v37 }
  0x6f   :  { %998 = vmatmul.mubr.msk.bf16.vlgmr.msra.gmra.mrb[0].mxu0 %vm141_vm1, %v123_v6 }
  0x70   :  { %1013 = vmatprep.mubr.msk.bf16.mxu0 %vm141_vm1, %v1087_v5  ;;  %1074 = vmatpush3.bf16.msra.mxu1 %v1071_v13 }
  0x71   :  { %1039 = vmatprep.subr.bf16.mxu1 %v1260_v0  ;;  %1010 = vmatpush3.bf16.msra.mxu0 %v1089_v37 }
  0x72   :  { %1011 = vmatprep.subr.bf16.mxu0 %v1090_v38 }
  0x75   :  { %1012 = vmatpush3.bf16.msra.mxu0 %v1090_v38 }
  0x76   :  { %1031 = vmatprep.subr.msk.mxu0 %vm522_vm2, %v509_v39 }
  0x78   :  { %1014 = vmatmul.mubr.msk.bf16.vlgmr.msra.gmra.mrb[4].mxu0 %vm141_vm1, %v1088_v7 }
  0x79   :  { %1032 = vmatpush3.msk.msra.mxu0 %vm522_vm2, %v509_v39  ;;  %v1091_v39 = vld [vmem:[%s1566_s8] sm:$0xff]  }
  0x7a   :  { %1047 = vmatprep.subr.bf16.mxu0 %v1260_v0 }
 0x13e   :  { %v1007_v22 = vpop.f32.mrb[0].mxu1 }
 0x13f   :  { %v267_v25 = vadd.f32 %v1007_v22, %v921_v19  ;;  %v258_v26 = vpop.f32.mrb[1].mxu1 }
 0x140   :  { %v259_v28 = vadd.f32 %v921_v19, %v258_v26  ;;  %v1008_v29 = vpop.f32.mrb[2].mxu1 }
 0x141   :  { %v270_v31 = vadd.f32 %v1008_v29, %v921_v19  ;;  %v261_v32 = vpop.f32.mrb[3].mxu1 }
 0x142   :  { %v179_v18 = vpop.f32.mrb[0].mxu0  ;;  %v262_v34 = vadd.f32 %v921_v19, %v261_v32 }
 0x143   :  { %v180_v20 = vadd.f32 %v179_v18, %v128_v16  ;;  %v999_v21 = vpop.f32.mrb[1].mxu0 }
 0x144   :  { %v182_v23 = vpop.f32.mrb[2].mxu0 }
 0x145   :  { %v348_v24 = vrot.slane %v180_v20, %v347_v17  ;;  %v1000_v27 = vpop.f32.mrb[3].mxu0 }
 0x147   :  { %v351_v30 = vmul.f32 %v348_v24, %v267_v25  ;;  %v349_v33 = vmul.f32 %v348_v24, %v259_v28  ;;  %v352_v35 = vmul.f32 %v348_v24, %v270_v31  ;;  %v350_v36 = vmul.f32 %v348_v24, %v262_v34 }
 0x149   :  { %1025 = vmatprep.mubr.msk.f32.mxu1 %vm141_vm1, %v349_v33 }
 0x14a   :  { %1026 = vmatmul.mubr.msk.f32.vlgmr.msra.gmra.mrb[4].mxu1 %vm141_vm1, %v350_v36 }
 0x14b   :  { %1028 = vmatprep.mubr.msk.f32.mxu1 %vm141_vm1, %v351_v30  ;;  %1040 = vmatpush3.bf16.msra.mxu1 %v1091_v39  ;;  %v1095_v39 = vld [vmem:[%s1572_s14] sm:$0xff]  }
 0x14c   :  { %1041 = vmatprep.subr.bf16.mxu1 %v1260_v0 }
 0x14e   :  { %1029 = vmatmul.mubr.msk.f32.gmra.mrb[6].mxu1 %vm141_vm1, %v352_v35  ;;  %v1015_v35 = vpop.f32.mrb[4].mxu0 }
 0x14f   :  { %1043 = vmatprep.mubr.msk.bf16.mxu1 %vm1261_vm0, %v1260_v0  ;;  %v330_v36 = vpop.f32.mrb[5].mxu0 }
 0x150   :  { %v1016_v37 = vpop.f32.mrb[6].mxu0 }
 0x151   :  { %v333_v38 = vpop.f32.mrb[7].mxu0 }
 0x21d   :  { %v1027_v40 = vpop.f32.mrb[4].mxu1 }
 0x21e   :  { %v456_v41 = vsel %vm454_vm3, %v1027_v40, -inf  ;;  %v435_v42 = vpop.f32.mrb[5].mxu1 }
 0x21f   :  { %v455_v43 = vsel %vm454_vm3, %v435_v42, -inf }
 0x220   :  { %v457_v44 = vmax.f32 %v455_v43, %v456_v41  ;;  %v928_v41 = vld [vmem:[#allocation7] ss:$0 sm:$0xff] }
 0x221   :  { %v1030_v45 = vpop.f32.mrb[6].mxu1  ;;  %v331_v43 = vadd.f32 %v928_v41, %v330_v36 }
 0x222   :  { %v458_v46 = vrot.slane %v457_v44, 4  ;;  %v465_v47 = vsel %vm454_vm3, %v1030_v45, -inf  ;;  %v445_v48 = vpop.f32.mrb[7].mxu1 }
 0x223   :  { %v464_v49 = vsel %vm454_vm3, %v445_v48, -inf }
 0x224   :  { %v459_v50 = vmax.f32 %v457_v44, %v458_v46  ;;  %v466_v51 = vmax.f32 %v464_v49, %v465_v47 }
 0x226   :  { %v460_v52 = vrot.slane %v459_v50, 2  ;;  %v467_v53 = vrot.slane %v466_v51, 4 }
 0x228   :  { %v461_v54 = vmax.f32 %v459_v50, %v460_v52  ;;  %v468_v55 = vmax.f32 %v466_v51, %v467_v53  ;;  %v339_v50 = vadd.f32 %v1015_v35, %v928_v41  ;;  %v947_v35 = vld [vmem:[%s1569_s11] ss:$0 sm:$0xff] }
 0x22a   :  { %v462_v56 = vrot.slane %v461_v54, 1  ;;  %v469_v57 = vrot.slane %v468_v55, 2 }
 0x22c   :  { %v463_v58 = vmax.f32 %v461_v54, %v462_v56  ;;  %v470_v59 = vmax.f32 %v468_v55, %v469_v57 }
 0x22e   :  { %v473_v60 = vsub.f32 %v435_v42, %v463_v58  ;;  %v474_v61 = vsub.f32 %v1027_v40, %v463_v58  ;;  %v471_v62 = vrot.slane %v470_v59, 1  ;;  %v1092_v40 = vld [vmem:[%s1566_s8 + $0x8] sm:$0xff]   ;;  %v334_v42 = vadd.f32 %v928_v41, %v333_v38 }
 0x22f   :  { %1042 = vmatpush3.bf16.msra.mxu1 %v1092_v40  ;;  %v1096_v40 = vld [vmem:[%s1572_s14 + $0x8] sm:$0xff]  }
 0x230   :  { %v477_v63 = vmul.f32 1.442695, %v473_v60  ;;  %v479_v1 = vmul.f32 1.442695, %v474_v61  ;;  %v472_v2 = vmax.f32 %v470_v59, %v471_v62  ;;  %1055 = vmatprep.subr.bf16.mxu1 %v1260_v0 }
 0x232   :  { %1099 = vpow2.f32 %v477_v63  ;;  %v475_v3 = vsub.f32 %v445_v48, %v472_v2  ;;  %v476_v4 = vsub.f32 %v1030_v45, %v472_v2  ;;  %v342_v48 = vadd.f32 %v1016_v37, %v928_v41  ;;  %v1097_v41 = vld [vmem:[%s1572_s14 + $0x10] sm:$0xff]  }
 0x233   :  { %1101 = vpow2.f32 %v479_v1 }
 0x234   :  { %v481_v5 = vmul.f32 1.442695, %v475_v3  ;;  %v483_v6 = vmul.f32 1.442695, %v476_v4 }
 0x236   :  { %1103 = vpow2.f32 %v481_v5 }
 0x237   :  { %1105 = vpow2.f32 %v483_v6 }
 0x23c   :  { %v1100_v7 = vpop.eup %1099 }
 0x23d   :  { %v1102_v8 = vpop.eup %1101  ;;  %v485_v9 = vsel %vm454_vm3, %v1100_v7, 0.0 }
 0x23e   :  { %v486_v10 = vsel %vm454_vm3, %v1102_v8, 0.0 }
 0x23f   :  { %v487_v11 = vadd.f32 %v486_v10, %v485_v9 }
 0x240   :  { %v1104_v12 = vpop.eup %1103 }
 0x241   :  { %v1106_v13 = vpop.eup %1105  ;;  %v488_v14 = vrot.slane %v487_v11, 4  ;;  %v494_v15 = vsel %vm454_vm3, %v1104_v12, 0.0 }
 0x242   :  { %v495_v16 = vsel %vm454_vm3, %v1106_v13, 0.0 }
 0x243   :  { %v489_v17 = vadd.f32 %v488_v14, %v487_v11  ;;  %v496_v18 = vadd.f32 %v495_v16, %v494_v15  ;;  %v942_v15 = vld [vmem:[#allocation8] ss:$0 sm:$0xff] }
 0x245   :  { %v490_v19 = vrot.slane %v489_v17, 2  ;;  %v497_v20 = vrot.slane %v496_v18, 4 }
 0x247   :  { %v491_v21 = vadd.f32 %v490_v19, %v489_v17  ;;  %v498_v22 = vadd.f32 %v497_v20, %v496_v18 }
 0x249   :  { %v492_v23 = vrot.slane %v491_v21, 1  ;;  %v499_v24 = vrot.slane %v498_v22, 2 }
 0x24b   :  { %v500_v25 = vadd.f32 %v499_v24, %v498_v22  ;;  %v493_v26 = vadd.f32 %v492_v23, %v491_v21 }
 0x24d   :  { %v501_v27 = vrot.slane %v500_v25, 1  ;;  %1107 = vrcp.f32 %v493_v26 }
 0x24f   :  { %v502_v28 = vadd.f32 %v501_v27, %v500_v25  ;;  %v1093_v27 = vld [vmem:[%s1570_s12] sm:$0xff]  }
 0x251   :  { %1109 = vrcp.f32 %v502_v28  ;;  %v1094_v28 = vld [vmem:[%s1570_s12 + $0x8] sm:$0xff]  }
 0x257   :  { %v1108_v29 = vpop.eup %1107 }
 0x258   :  { %v504_v30 = vmul.f32 %v1108_v29, %v1100_v7  ;;  %v505_v31 = vmul.f32 %v1108_v29, %v1102_v8 }
 0x25a   :  { %1033 = vmatprep.mubr.msk.f32.mxu0 %vm454_vm3, %v504_v30 }
 0x25b   :  { %v1110_v32 = vpop.eup %1109  ;;  %1034 = vmatmul.mubr.msk.f32.vlgmr.msra.gmra.mrb[8].mxu0 %vm454_vm3, %v505_v31 }
 0x25c   :  { %v507_v33 = vmul.f32 %v1110_v32, %v1104_v12  ;;  %v508_v34 = vmul.f32 %v1110_v32, %v1106_v13  ;;  %1048 = vmatpush3.bf16.msra.mxu0 %v1093_v27 }
 0x25d   :  { %1049 = vmatprep.subr.bf16.mxu0 %v1260_v0 }
 0x25e   :  { %1036 = vmatprep.mubr.msk.f32.mxu0 %vm454_vm3, %v507_v33  ;;  %v946_v33 = vld [vmem:[#allocation10] ss:$0 sm:$0xff] }
 0x25f   :  { %1037 = vmatmul.mubr.msk.f32.gmra.mrb[10].mxu0 %vm454_vm3, %v508_v34 }
 0x260   :  { %1051 = vmatprep.mubr.msk.bf16.mxu0 %vm1261_vm0, %v1260_v0  ;;  %1050 = vmatpush3.bf16.msra.mxu0 %v1094_v28 }
 0x32e   :  { %v1035_v44 = vpop.f32.mrb[8].mxu0 }
 0x32f   :  { %v612_v45 = vmul.f32 %v1035_v44, %v334_v42  ;;  %v592_v46 = vpop.f32.mrb[9].mxu0  ;;  %v1098_v42 = vld [vmem:[%s1572_s14 + $0x18] sm:$0xff]  }
 0x330   :  { %v611_v47 = vmul.f32 %v592_v46, %v331_v43  ;;  %v948_v43 = vld [vmem:[%s1571_s13] ss:$0 sm:$0xff] }
 0x331   :  { %v616_v49 = vsel %vm141_vm1, %v612_v45, 0.0 }
 0x332   :  { %v615_v51 = vsel %vm141_vm1, %v611_v47, 0.0  ;;  %v1038_v52 = vpop.f32.mrb[10].mxu0 }
 0x333   :  { %v617_v53 = vadd.f32 %v616_v49, %v615_v51  ;;  %v614_v54 = vmul.f32 %v1038_v52, %v342_v48  ;;  %v602_v55 = vpop.f32.mrb[11].mxu0 }
 0x334   :  { %v613_v56 = vmul.f32 %v602_v55, %v339_v50 }
 0x335   :  { %v618_v57 = vrot.slane %v617_v53, 4  ;;  %v625_v58 = vsel %vm141_vm1, %v614_v54, 0.0 }
 0x336   :  { %v624_v59 = vsel %vm141_vm1, %v613_v56, 0.0 }
 0x337   :  { %v619_v60 = vadd.f32 %v618_v57, %v617_v53  ;;  %v626_v61 = vadd.f32 %v625_v58, %v624_v59  ;;  %v952_v58 = vld [vmem:[%s1573_s15] ss:$0 sm:$0xff] }
 0x339   :  { %v620_v62 = vrot.slane %v619_v60, 2  ;;  %v627_v63 = vrot.slane %v626_v61, 4 }
 0x33b   :  { %v621_v1 = vadd.f32 %v620_v62, %v619_v60  ;;  %v628_v2 = vadd.f32 %v627_v63, %v626_v61 }
 0x33d   :  { %v622_v3 = vrot.slane %v621_v1, 1  ;;  %v629_v4 = vrot.slane %v628_v2, 2 }
 0x33f   :  { %v623_v5 = vadd.f32 %v622_v3, %v621_v1  ;;  %v630_v6 = vadd.f32 %v629_v4, %v628_v2 }
 0x341   :  { %v631_v7 = vrot.slane %v630_v6, 1  ;;  %v633_v8 = vpack.c.bf16 %v623_v5, %v623_v5 }
 0x343   :  { %v632_v9 = vadd.f32 %v631_v7, %v630_v6  ;;  %v648_v11 = vunpack.c.l.b16 %v633_v8 }
 0x345   :  { %v634_v10 = vpack.c.bf16 %v632_v9, %v632_v9 }
 0x347   :  { %v649_v12 = vunpack.c.l.b16 %v634_v10 }
 0x349   :  { %v651_v13 = vsel %vm650_vm4, %v649_v12, %v648_v11 }
 0x34a   :  { %v652_v14 = vpack.c.b16 %v651_v13, %v651_v13 }
 0x34c   :  { %1044 = vmatmul.mubr.msk.bf16.vlgmr.msra.gmra.mrb[8].mxu1 %vm141_vm1, %v652_v14 }
 0x34d   :  { %1063 = vmatprep.mubr.msk.bf16.mxu1 %vm1261_vm0, %v1260_v0  ;;  %1056 = vmatpush3.bf16.msra.mxu1 %v1095_v39 }
 0x34e   :  { %1057 = vmatprep.subr.bf16.mxu1 %v1260_v0 }
 0x351   :  { %1058 = vmatpush3.bf16.msra.mxu1 %v1096_v40 }
 0x352   :  { %1059 = vmatprep.subr.bf16.mxu1 %v1260_v0 }
 0x355   :  { %1060 = vmatpush3.bf16.msra.mxu1 %v1097_v41 }
 0x356   :  { %1061 = vmatprep.subr.bf16.mxu1 %v1260_v0 }
 0x359   :  { %1062 = vmatpush3.bf16.msra.mxu1 %v1098_v42 }
 0x41f   :  { %v702_v16 = vpop.f32.mrb[8].mxu1 }
 0x420   :  { %v1506_v17 = vadd.f32 %v942_v15, %v702_v16  ;;  %v1045_v18 = vpop.f32.mrb[9].mxu1 }
 0x421   :  { %v705_v19 = vpop.f32.mrb[10].mxu1 }
 0x422   :  { %v1046_v20 = vpop.f32.mrb[11].mxu1  ;;  %v709_v21 = vsel %vm708_vm5, %v1506_v17, 0.0 }
 0x423   :  { %710 = vadd.xlane.f32.xlu0 %v709_v21 }
 0x4b0   :  { %v711_v22 = vpop.xlane.xlu0 %710 }
 0x4b1   :  { %v713_v23 = vmul.f32 0.03125, %v711_v22 }
 0x4b3   :  { %v714_v24 = vsub.f32 %v1506_v17, %v713_v23 }
 0x4b5   :  { %v715_v25 = vmul.f32 %v714_v24, %v714_v24 }
 0x4b7   :  { %v716_v26 = vsel %vm708_vm5, %v715_v25, 0.0 }
 0x4b8   :  { %717 = vadd.xlane.f32.xlu0 %v716_v26 }
 0x545   :  { %v718_v29 = vpop.xlane.xlu0 %717 }
 0x546   :  { %v719_v30 = vmul.f32 0.03125, %v718_v29 }
 0x548   :  { %v720_v31 = vadd.f32 1e-06, %v719_v30 }
 0x54a   :  { %1111 = vrsqrt.f32 %v720_v31 }
 0x554   :  { %v1112_v32 = vpop.eup %1111 }
 0x555   :  { %v722_v34 = vmul.f32 %v1112_v32, %v714_v24 }
 0x557   :  { %v730_v36 = vmul.f32 %v946_v33, %v722_v34 }
 0x559   :  { %v738_v37 = vadd.f32 %v947_v35, %v730_v36 }
 0x55b   :  { %v739_v38 = vpack.c.bf16 %v738_v37, %v738_v37 }
 0x55d   :  { %1052 = vmatmul.mubr.msk.bf16.vlgmr.msra.gmra.mrb[12].mxu0 %vm141_vm1, %v739_v38 }
 0x630   :  { %v800_v44 = vpop.f32.mrb[12].mxu0 }
 0x631   :  { %v801_v45 = vadd.f32 %v948_v43, %v800_v44  ;;  %v1053_v46 = vpop.f32.mrb[13].mxu0 }
 0x632   :  { %v803_v47 = vpop.f32.mrb[14].mxu0 }
 0x633   :  { %v807_v48 = vmul.f32 0.044715, %v801_v45  ;;  %v1054_v49 = vpop.f32.mrb[15].mxu0  ;;  %v806_v55 = vmul.f32 0.5, %v801_v45 }
 0x635   :  { %v808_v50 = vmul.f32 %v807_v48, %v801_v45 }
 0x637   :  { %v809_v51 = vmul.f32 %v808_v50, %v801_v45 }
 0x639   :  { %v810_v52 = vadd.f32 %v809_v51, %v801_v45 }
 0x63b   :  { %v811_v53 = vmul.f32 0.7978846, %v810_v52 }
 0x63d   :  { %1113 = vtanh.f32 %v811_v53 }
 0x647   :  { %v1114_v54 = vpop.eup %1113 }
 0x648   :  { %v813_v56 = vadd.f32 1.0, %v1114_v54 }
 0x64a   :  { %v814_v0 = vmul.f32 %v813_v56, %v806_v55 }
 0x64c   :  { %v815_v57 = vpack.c.bf16 %v814_v0, %v814_v0 }
 0x64e   :  { %1064 = vmatmul.mubr.msk.bf16.vlgmr.msra.gmra.mrb[12].mxu1 %vm855_vm6, %v815_v57 }
 0x721   :  { %v893_v59 = vpop.f32.mrb[12].mxu1 }
 0x722   :  { %v894_v60 = vadd.f32 %v952_v58, %v893_v59  ;;  %v1065_v61 = vpop.f32.mrb[13].mxu1 }
 0x723   :  { %v896_v62 = vpop.f32.mrb[14].mxu1 }
 0x724   :  { %v899_v63 = vadd.f32 %v894_v60, %v1506_v17  ;;  %v1066_v1 = vpop.f32.mrb[15].mxu1 }
 0x726   :  { %900 = vst.msk [vmem:[#allocation11] sm:$0x3] %vm708_vm5, %v899_v63 }
 0x727   :  { %1236 = shalt.err (!%p1233_p2)
}
 0x728   :  { %s1237_s24 = scalar_lea.hbm %s1576_s18, 32 }
 0x729   :  { %p1238_p3 = scmp.ne.s32.totalorder %s1576_s18, %s1237_s24  ;;  %p1241_p4 = scmp.lt.u32.totalorder %s1237_s24, %s1576_s18 }
 0x72b   :  { %p1243_p5 = pnand %p1241_p4, %p1238_p3 }
 0x72d   :  { %1246 = shalt.err (!%p1243_p5)
}
 0x72e   :  { %910 = dma.vmem_to_hbm [thread:$0]  %s908_s16, 32, %s1576_s18, [#allocation4]  }
 0x72f   :  { %1253 = dma.done.wait [#allocation4], 32  }
 0x730   :  { %1254 = vsyncadd [#allocation4], 4294967264 }
 0x731   :  { %914 = vsyncpa [#allocation3], 1 }
 0x732   :  { %915 = vsyncpa [#allocation6], 1 }
 0x733   :  { %916 = vsyncpa [#allocation9], 1 }
 0x734   :  { %917 = vsyncpa [#allocation4], 1 }

</bundles_post_ra>
